<compile_context>
chip_gen: v6e
topology: v6e:2x2x1
jax: 0.10.0
libtpu: 0.0.40
codegen_flags: <defaults>
</compile_context>

<pallas_src>
import functools
import numpy as np

import jax
import jax.numpy as jnp
from jax.experimental import pallas as pl
from jax.experimental.pallas import tpu as pltpu


_EPS = 1e-5


def _vmem_limit_bytes():
    # ~3/4 of physical VMEM: ~96 MiB on v5e/v6e (128 MiB), ~48 MiB on v7x (64 MiB).
    try:
        cap = pltpu.get_tpu_info().vmem_capacity_bytes
    except Exception:
        cap = 64 * 1024 * 1024
    return int(min(cap * 3 // 4, 100 * 1024 * 1024))


_VMEM_LIMIT = _vmem_limit_bytes()


# ----------------------------------------------------------------------------
# In-kernel helpers
# ----------------------------------------------------------------------------

def _layernorm(x, g, b, eps):
    mu = jnp.mean(x, axis=-1, keepdims=True)
    var = jnp.mean(jnp.square(x - mu), axis=-1, keepdims=True)
    return (x - mu) * jax.lax.rsqrt(var + eps) * g + b


def _gelu_tanh(x):
    # tanh-form GELU: the tanh goes to the EUP slot, freeing the 4 VALU slots
    # for LN/bias/residual work (review: polynomial erf competed for VALU).
    return 0.5 * x * (1.0 + jnp.tanh(0.7978845608028654 *
                                     (x + 0.044715 * x * x * x)))


# ----------------------------------------------------------------------------
# Pallas kernel bodies
# ----------------------------------------------------------------------------

def _matmul_ln_kernel(x_ref, w_ref, b_ref, g_ref, beta_ref, o_ref, *, eps):
    """y = LN(x @ W + b)  (patch embed)."""
    h = jnp.dot(x_ref[...].astype(jnp.bfloat16), w_ref[...],
                preferred_element_type=jnp.float32) + b_ref[...]
    o_ref[...] = _layernorm(h, g_ref[...], beta_ref[...], eps).astype(o_ref.dtype)


def _ln_matmul_kernel(x_ref, g_ref, beta_ref, w_ref, b_ref, o_ref, *, eps):
    """y = LN(x) @ W + b  (norm1->qkv, patch-merge norm->reduction)."""
    z = _layernorm(x_ref[...], g_ref[...], beta_ref[...], eps)
    o_ref[...] = (jnp.dot(z.astype(jnp.bfloat16), w_ref[...],
                          preferred_element_type=jnp.float32)
                  + b_ref[...]).astype(o_ref.dtype)


def _res_matmul_kernel(res_ref, x_ref, w_ref, b_ref, o_ref):
    """y = res + x @ W + b  (attention proj + first residual)."""
    o_ref[...] = (res_ref[...]
                  + jnp.dot(x_ref[...].astype(jnp.bfloat16), w_ref[...],
                            preferred_element_type=jnp.float32)
                  + b_ref[...]).astype(o_ref.dtype)


def _mlp_kernel(x_ref, g_ref, beta_ref, w1_ref, b1_ref, w2_ref, b2_ref, o_ref,
                *, eps):
    """y = x + GELU(LN(x) @ W1 + b1) @ W2 + b2  (norm2 + Mlp + residual)."""
    x = x_ref[...]
    z = _layernorm(x, g_ref[...], beta_ref[...], eps)
    h = jnp.dot(z.astype(jnp.bfloat16), w1_ref[...],
                preferred_element_type=jnp.float32) + b1_ref[...]
    h = _gelu_tanh(h)
    y = jnp.dot(h.astype(jnp.bfloat16), w2_ref[...],
                preferred_element_type=jnp.float32) + b2_ref[...]
    o_ref[...] = (x + y).astype(o_ref.dtype)


def _head_kernel(x_ref, g_ref, beta_ref, w_ref, b_ref, o_ref, *, eps):
    """logits = mean_tokens(LN(x)) @ Wh + bh  (one image per grid step)."""
    z = _layernorm(x_ref[...], g_ref[...], beta_ref[...], eps)   # (1, L, C)
    pooled = jnp.mean(z, axis=1)                                  # (1, C)
    out = jnp.dot(pooled.astype(jnp.bfloat16), w_ref[...],
                  preferred_element_type=jnp.float32) + b_ref[...]
    o_ref[...] = out.reshape(1, 1, -1).astype(o_ref.dtype)


def _attn_heads(qkv, rpb_ref, mask, o_ref, *, scale, nh, d):
    """All heads of all windows of one image; per-head lane slices of (W,N,3C)."""
    c = nh * d
    outs = []
    for h in range(nh):                                   # static unroll
        q = qkv[:, :, h * d:(h + 1) * d] * scale          # scale folded into q
        k = qkv[:, :, c + h * d: c + (h + 1) * d]
        v = qkv[:, :, 2 * c + h * d: 2 * c + (h + 1) * d]
        s = jnp.einsum('wnd,wmd->wnm', q, k,
                       preferred_element_type=jnp.float32)
        s = s + rpb_ref[h]
        if mask is not None:
            s = s + mask
        m = jnp.max(s, axis=-1, keepdims=True)
        e = jnp.exp(s - m)
        p = e * pl.reciprocal(jnp.sum(e, axis=-1, keepdims=True), approx=True)
        outs.append(jnp.einsum('wnm,wmd->wnd', p.astype(jnp.bfloat16), v,
                               preferred_element_type=jnp.float32))
    # Single lane-dense (W, N, C) store instead of per-head D-wide stores.
    o_ref[...] = jnp.concatenate(outs, axis=-1).astype(o_ref.dtype)


def _attn_kernel(qkv_ref, rpb_ref, o_ref, *, scale, nh, d):
    _attn_heads(qkv_ref[...], rpb_ref, None, o_ref, scale=scale, nh=nh, d=d)


def _attn_masked_kernel(qkv_ref, rpb_ref, mask_ref, o_ref, *, scale, nh, d):
    _attn_heads(qkv_ref[...], rpb_ref, mask_ref[...], o_ref,
                scale=scale, nh=nh, d=d)


# ----------------------------------------------------------------------------
# pallas_call wrappers
# ----------------------------------------------------------------------------

def _round_up(x, m):
    return ((x + m - 1) // m) * m


def _choose_tile(m, target):
    """Return (tile_rows, padded_M). tile divides padded_M; tile%8==0 or ==padded_M."""
    target = max(8, target - target % 8)
    if m <= target:
        mp = _round_up(m, 8)
        return mp, mp
    t = target
    while t >= 8:
        if m % t == 0:
            return t, m
        t -= 8
    return target, _round_up(m, target)       # pad instead of one giant block


def _row_tiled_call(kernel, row_args, resident_args, out_dim,
                    out_dtype=jnp.float32, tile_target=512):
    """Grid over token rows (tm, K); all `resident_args` fully VMEM-resident."""
    M = row_args[0].shape[0]
    tm, Mp = _choose_tile(M, tile_target)
    if Mp != M:
        row_args = [jnp.pad(a, ((0, Mp - M), (0, 0))) for a in row_args]
    in_specs = []
    for a in row_args:
        kdim = a.shape[1]
        in_specs.append(pl.BlockSpec((tm, kdim), lambda i: (i, 0)))
    # TODO(synk): resident weight specs could use pipeline_mode=pl.Buffered(1)
    # to avoid double-buffered weight copies on v7x; left at the default for
    # lowering portability (demo shapes are far from any VMEM limit).
    for prm in resident_args:
        shp = prm.shape
        in_specs.append(pl.BlockSpec(shp, lambda i, n=len(shp): (0,) * n))
    out = pl.pallas_call(
        kernel,
        grid=(Mp // tm,),
        in_specs=in_specs,
        out_specs=pl.BlockSpec((tm, out_dim), lambda i: (i, 0)),
        out_shape=jax.ShapeDtypeStruct((Mp, out_dim), out_dtype),
        compiler_params=pltpu.CompilerParams(
            dimension_semantics=("parallel",),
            vmem_limit_bytes=_VMEM_LIMIT),
    )(*row_args, *resident_args)
    return out if Mp == M else out[:M]


def patch_embed_fused(x, w, b, g, beta):
    return _row_tiled_call(
        functools.partial(_matmul_ln_kernel, eps=_EPS),
        [x], [w, b.reshape(1, -1), g.reshape(1, -1), beta.reshape(1, -1)],
        w.shape[1])


def ln_matmul(x, g, beta, w, b, out_dtype=jnp.float32):
    return _row_tiled_call(
        functools.partial(_ln_matmul_kernel, eps=_EPS),
        [x], [g.reshape(1, -1), beta.reshape(1, -1), w, b.reshape(1, -1)],
        w.shape[1], out_dtype=out_dtype)


def residual_matmul(res, x, w, b):
    return _row_tiled_call(
        _res_matmul_kernel, [res, x], [w, b.reshape(1, -1)], w.shape[1])


def mlp_fused(x, g, beta, w1, b1, w2, b2):
    # Smaller row tile: the (tm, 4C) f32 GELU intermediate is the VMEM hog.
    return _row_tiled_call(
        functools.partial(_mlp_kernel, eps=_EPS),
        [x], [g.reshape(1, -1), beta.reshape(1, -1), w1, b1.reshape(1, -1),
              w2, b2.reshape(1, -1)],
        x.shape[1], tile_target=256)


def head_fused(x, g, beta, w, b):
    B, L, C = x.shape
    ncls = w.shape[1]

    def const_spec(shape):
        return pl.BlockSpec(shape, lambda i, n=len(shape): (0,) * n)

    out = pl.pallas_call(
        functools.partial(_head_kernel, eps=_EPS),
        grid=(B,),
        in_specs=[pl.BlockSpec((1, L, C), lambda i: (i, 0, 0)),
                  const_spec((1, C)), const_spec((1, C)),
                  const_spec(w.shape), const_spec((1, ncls))],
        out_specs=pl.BlockSpec((1, 1, ncls), lambda i: (i, 0, 0)),
        out_shape=jax.ShapeDtypeStruct((B, 1, ncls), jnp.float32),
        compiler_params=pltpu.CompilerParams(
            dimension_semantics=("parallel",),
            vmem_limit_bytes=_VMEM_LIMIT),
    )(x, g.reshape(1, C), beta.reshape(1, C), w, b.reshape(1, ncls))
    return out.reshape(B, ncls)


def pallas_window_attention(qkv, rpb, mask, scale, n_win, nh, d):
    """qkv: (B_, N, 3C) bf16; rpb: (nh, N, N) f32; mask: (nW, N, N) f32 | None.

    Grid = (image,); each step processes all n_win windows and all heads of
    one image, slicing q/k/v per head from the lane-dense (n_win, N, 3C)
    block, and writes a lane-dense (n_win, N, C) bf16 block — no head-major
    HBM transposes, no broadcast bias tensor in HBM.
    """
    B_, N, C3 = qkv.shape
    C = nh * d
    assert B_ % n_win == 0
    B_img = B_ // n_win

    qkv_spec = pl.BlockSpec((n_win, N, C3), lambda i: (i, 0, 0))
    rpb_spec = pl.BlockSpec(rpb.shape, lambda i: (0, 0, 0))
    out_spec = pl.BlockSpec((n_win, N, C), lambda i: (i, 0, 0))
    out_shape = jax.ShapeDtypeStruct((B_, N, C), jnp.bfloat16)
    cp = pltpu.CompilerParams(dimension_semantics=("parallel",),
                              vmem_limit_bytes=_VMEM_LIMIT)

    if mask is None:
        return pl.pallas_call(
            functools.partial(_attn_kernel, scale=scale, nh=nh, d=d),
            grid=(B_img,),
            in_specs=[qkv_spec, rpb_spec],
            out_specs=out_spec, out_shape=out_shape, compiler_params=cp,
        )(qkv, rpb)

    mask_spec = pl.BlockSpec(mask.shape, lambda i: (0, 0, 0))
    return pl.pallas_call(
        functools.partial(_attn_masked_kernel, scale=scale, nh=nh, d=d),
        grid=(B_img,),
        in_specs=[qkv_spec, rpb_spec, mask_spec],
        out_specs=out_spec, out_shape=out_shape, compiler_params=cp,
    )(qkv, rpb, mask)


# ----------------------------------------------------------------------------
# Glue: window helpers / static tables (plain JAX / numpy)
# ----------------------------------------------------------------------------
# TODO(synk): window_partition/window_reverse (+ roll) remain XLA-level token
# permutations between kernels; folding them into the attention BlockSpec
# index_maps (grid over image/win_row/win_col) would remove ~4 activation-sized
# HBM passes per block but is left out of this revision.

def window_partition(x, ws):
    b, h, w, c = x.shape
    x = x.reshape(b, h // ws, ws, w // ws, ws, c)
    return x.transpose(0, 1, 3, 2, 4, 5).reshape(-1, ws, ws, c)


def window_reverse(windows, ws, h, w):
    b = windows.shape[0] // (h * w // ws // ws)
    x = windows.reshape(b, h // ws, w // ws, ws, ws, -1)
    return x.transpose(0, 1, 3, 2, 4, 5).reshape(b, h, w, -1)


def make_rel_pos_index(ws):
    coords = np.stack(np.meshgrid(np.arange(ws), np.arange(ws), indexing='ij'))
    cf = coords.reshape(2, -1)
    rel = cf[:, :, None] - cf[:, None, :]
    rel = rel.transpose(1, 2, 0).copy()
    rel[:, :, 0] += ws - 1
    rel[:, :, 1] += ws - 1
    rel[:, :, 0] *= 2 * ws - 1
    return jnp.asarray(rel.sum(-1), dtype=jnp.int32)


def make_attn_mask(H, W, ws, ss):
    img = np.zeros((1, H, W, 1), np.float32)
    cnt = 0
    for hs in (slice(0, -ws), slice(-ws, -ss), slice(-ss, None)):
        for wsl in (slice(0, -ws), slice(-ws, -ss), slice(-ss, None)):
            img[:, hs, wsl, :] = cnt
            cnt += 1
    mw = window_partition(jnp.asarray(img), ws).reshape(-1, ws * ws)
    am = mw[:, None, :] - mw[:, :, None]
    return jnp.where(am != 0, -100.0, 0.0).astype(jnp.float32)


# ----------------------------------------------------------------------------
# Parameter init (deterministic, synthetic).  MXU weights stored bf16.
# ----------------------------------------------------------------------------

class RNG:
    def __init__(self, key):
        self.key = key

    def trunc(self, shape, std=0.02):
        self.key, sub = jax.random.split(self.key)
        return std * jax.random.truncated_normal(sub, -2.0, 2.0, shape,
                                                 jnp.float32)

    def trunc_bf16(self, shape, std=0.02):
        return self.trunc(shape, std).astype(jnp.bfloat16)


def init_block(rng, dim, input_resolution, num_heads, window_size, shift_size,
               mlp_ratio):
    if min(input_resolution) <= window_size:
        shift_size = 0
        window_size = min(input_resolution)
    hidden = int(dim * mlp_ratio)
    n_win = (input_resolution[0] // window_size) * \
            (input_resolution[1] // window_size)
    N = window_size * window_size
    rel_table = rng.trunc(((2 * window_size - 1) ** 2, num_heads))
    rel_index = make_rel_pos_index(window_size)
    # Precompute the (nh, N, N) relative-position bias once (static wrt input).
    rel_bias = (rel_table[rel_index.reshape(-1)]
                .reshape(N, N, num_heads).transpose(2, 0, 1))
    return {
        'window_size': window_size,
        'shift_size': shift_size,
        'num_heads': num_heads,
        'input_resolution': input_resolution,
        'n_win': n_win,
        'norm1_g': jnp.ones((dim,), jnp.float32),
        'norm1_b': jnp.zeros((dim,), jnp.float32),
        'qkv_w': rng.trunc_bf16((dim, 3 * dim)),
        'qkv_b': jnp.zeros((3 * dim,), jnp.float32),
        'proj_w': rng.trunc_bf16((dim, dim)),
        'proj_b': jnp.zeros((dim,), jnp.float32),
        'rel_pos_bias': rel_bias,
        'norm2_g': jnp.ones((dim,), jnp.float32),
        'norm2_b': jnp.zeros((dim,), jnp.float32),
        'fc1_w': rng.trunc_bf16((dim, hidden)),
        'fc1_b': jnp.zeros((hidden,), jnp.float32),
        'fc2_w': rng.trunc_bf16((hidden, dim)),
        'fc2_b': jnp.zeros((dim,), jnp.float32),
        'attn_mask': (make_attn_mask(input_resolution[0], input_resolution[1],
                                     window_size, shift_size)
                      if shift_size > 0 else None),
    }


def init_model(seed, cfg):
    rng = RNG(jax.random.PRNGKey(seed))
    p_sz, E, Cin = cfg['patch_size'], cfg['embed_dim'], cfg['in_chans']
    grid = (cfg['img_size'] // p_sz, cfg['img_size'] // p_sz)
    params = {
        'patch_embed': {
            'proj_w': rng.trunc_bf16((Cin * p_sz * p_sz, E)),
            'proj_b': jnp.zeros((E,), jnp.float32),
            'norm_g': jnp.ones((E,), jnp.float32),
            'norm_b': jnp.zeros((E,), jnp.float32),
        },
        'layers': [],
    }
    num_layers = len(cfg['depths'])
    for i in range(num_layers):
        dim = E * 2 ** i
        res = (grid[0] // 2 ** i, grid[1] // 2 ** i)
        blocks = []
        for d in range(cfg['depths'][i]):
            shift = 0 if d % 2 == 0 else cfg['window_size'] // 2
            blocks.append(init_block(rng, dim, res, cfg['num_heads'][i],
                                     cfg['window_size'], shift,
                                     cfg['mlp_ratio']))
        layer = {'blocks': blocks, 'downsample': None}
        if i < num_layers - 1:
            layer['downsample'] = {
                'input_resolution': res,
                'norm_g': jnp.ones((4 * dim,), jnp.float32),
                'norm_b': jnp.zeros((4 * dim,), jnp.float32),
                'red_w': rng.trunc_bf16((4 * dim, 2 * dim)),
            }
        params['layers'].append(layer)
    nf = E * 2 ** (num_layers - 1)
    params['norm_g'] = jnp.ones((nf,), jnp.float32)
    params['norm_b'] = jnp.zeros((nf,), jnp.float32)
    params['head_w'] = rng.trunc_bf16((nf, cfg['num_classes']))
    params['head_b'] = jnp.zeros((cfg['num_classes'],), jnp.float32)
    return params


# ----------------------------------------------------------------------------
# Forward pass
# ----------------------------------------------------------------------------

def window_attention_forward(xw_flat, B_, p):
    """xw_flat: (B_*N, C) pre-norm window tokens.  Returns xw_flat + attn path."""
    ws = p['window_size']
    N = ws * ws
    C = xw_flat.shape[1]
    nh = p['num_heads']
    D = C // nh
    scale = D ** (-0.5)

    # Fused norm1 + qkv projection; bf16 output (consumed as bf16 anyway).
    qkv = ln_matmul(xw_flat, p['norm1_g'], p['norm1_b'], p['qkv_w'],
                    p['qkv_b'], out_dtype=jnp.bfloat16)
    qkv = qkv.reshape(B_, N, 3 * C)                        # free (row-major)

    out = pallas_window_attention(qkv, p['rel_pos_bias'], p['attn_mask'],
                                  scale, p['n_win'], nh, D)  # (B_, N, C) bf16
    out = out.reshape(B_ * N, C)                            # free (row-major)

    # Fused proj + first residual (windowing is a token permutation, so adding
    # the window-ordered shortcut here is equivalent to adding after reverse).
    return residual_matmul(xw_flat, out, p['proj_w'], p['proj_b'])


def swin_block_forward(x, p):
    H, W = p['input_resolution']
    B, L, C = x.shape
    ws, ss = p['window_size'], p['shift_size']

    xr = x.reshape(B, H, W, C)
    if ss > 0:
        xr = jnp.roll(xr, shift=(-ss, -ss), axis=(1, 2))
    xw = window_partition(xr, ws)                       # (B_, ws, ws, C)
    B_ = xw.shape[0]
    xw_flat = xw.reshape(B_ * ws * ws, C)

    yw_flat = window_attention_forward(xw_flat, B_, p)  # shortcut already added
    yw = yw_flat.reshape(B_, ws, ws, C)
    y = window_reverse(yw, ws, H, W)
    if ss > 0:
        y = jnp.roll(y, shift=(ss, ss), axis=(1, 2))
    x = y.reshape(B, L, C)

    # Fused norm2 + MLP (fc1 -> GELU -> fc2) + residual.
    out = mlp_fused(x.reshape(B * L, C), p['norm2_g'], p['norm2_b'],
                    p['fc1_w'], p['fc1_b'], p['fc2_w'], p['fc2_b'])
    return out.reshape(B, L, C)


def patch_merging_forward(x, p):
    H, W = p['input_resolution']
    B, L, C = x.shape
    xr = x.reshape(B, H, W, C)
    x0 = xr[:, 0::2, 0::2, :]
    x1 = xr[:, 1::2, 0::2, :]
    x2 = xr[:, 0::2, 1::2, :]
    x3 = xr[:, 1::2, 1::2, :]
    xc = jnp.concatenate([x0, x1, x2, x3], axis=-1)
    xc = xc.reshape(B * (H // 2) * (W // 2), 4 * C)
    # Fused LN(4C) + bias-free reduction matmul (zeros bias keeps one kernel).
    y = ln_matmul(xc, p['norm_g'], p['norm_b'], p['red_w'],
                  jnp.zeros((2 * C,), jnp.float32))
    return y.reshape(B, (H // 2) * (W // 2), 2 * C)


def swin_forward(x_nchw, params, cfg):
    B, Cin, H, W = x_nchw.shape
    psz = cfg['patch_size']
    gh, gw = H // psz, W // psz

    # PatchEmbed: stride-p conv == per-patch matmul over (Cin, ph, pw) rows,
    # fused with the post-embed LayerNorm.
    pe = params['patch_embed']
    xp = (x_nchw.reshape(B, Cin, gh, psz, gw, psz)
          .transpose(0, 2, 4, 1, 3, 5)
          .reshape(B * gh * gw, Cin * psz * psz))
    x = patch_embed_fused(xp, pe['proj_w'], pe['proj_b'],
                          pe['norm_g'], pe['norm_b'])
    x = x.reshape(B, gh * gw, cfg['embed_dim'])

    for layer in params['layers']:
        for blk in layer['blocks']:
            x = swin_block_forward(x, blk)
        if layer['downsample'] is not None:
            x = patch_merging_forward(x, layer['downsample'])

    # Fused final LayerNorm + AdaptiveAvgPool1d(1) over tokens + classifier,
    # gridded over the batch.
    return head_fused(x, params['norm_g'], params['norm_b'],
                      params['head_w'], params['head_b'])


# ----------------------------------------------------------------------------

if __name__ == "__main__":
    cfg = dict(img_size=16, patch_size=4, in_chans=3, num_classes=10,
               embed_dim=32, depths=(2, 2), num_heads=(2, 4), window_size=2,
               mlp_ratio=4.0)
    params = init_model(0, cfg)

    key = jax.random.PRNGKey(0)
    x = jax.random.normal(
        key, (2, cfg['in_chans'], cfg['img_size'], cfg['img_size']),
        jnp.float32)

    logits = swin_forward(x, params, cfg)
    logits = jax.block_until_ready(logits)
    assert logits.shape == (2, cfg['num_classes'])
    assert bool(jnp.all(jnp.isfinite(logits)))
    print("KERNEL_OK")
</pallas_src>

<mosaic_0001>
module attributes {stable_mosaic.version = 11 : i64} {
  func.func @_matmul_ln_kernel(%arg0: i32, %arg1: memref<32x48xf32, #tpu.memory_space<vmem>>, %arg2: memref<48x32xbf16, #tpu.memory_space<vmem>>, %arg3: memref<1x32xf32, #tpu.memory_space<vmem>>, %arg4: memref<1x32xf32, #tpu.memory_space<vmem>>, %arg5: memref<1x32xf32, #tpu.memory_space<vmem>>, %arg6: memref<32x32xf32, #tpu.memory_space<vmem>>) attributes {dimension_semantics = [#tpu.dimension_semantics<parallel>], iteration_bounds = array<i64: 1>, scalar_prefetch = 0 : i64, scratch_operands = 0 : i64, tpu.core_type = #tpu.core_type<tc>, window_params = [{transform_indices = @transform_0, window_bounds = array<i64: 32, 48>}, {pipeline_mode = #tpu.pipeline_mode<synchronous>, transform_indices = @transform_1, window_bounds = array<i64: 48, 32>}, {pipeline_mode = #tpu.pipeline_mode<synchronous>, transform_indices = @transform_2, window_bounds = array<i64: 1, 32>}, {pipeline_mode = #tpu.pipeline_mode<synchronous>, transform_indices = @transform_3, window_bounds = array<i64: 1, 32>}, {pipeline_mode = #tpu.pipeline_mode<synchronous>, transform_indices = @transform_4, window_bounds = array<i64: 1, 32>}, {transform_indices = @transform_5, window_bounds = array<i64: 32, 32>}]} {
    %c0 = arith.constant 0 : index
    %c0_0 = arith.constant 0 : index
    %0 = vector.load %arg1[%c0, %c0_0] : memref<32x48xf32, #tpu.memory_space<vmem>>, vector<32x48xf32>
    %1 = arith.truncf %0 : vector<32x48xf32> to vector<32x48xbf16>
    %c0_1 = arith.constant 0 : index
    %c0_2 = arith.constant 0 : index
    %2 = vector.load %arg2[%c0_1, %c0_2] : memref<48x32xbf16, #tpu.memory_space<vmem>>, vector<48x32xbf16>
    %cst = arith.constant dense<0.000000e+00> : vector<32x32xf32>
    %3 = tpu.matmul %1, %2, %cst {dimension_numbers = #tpu.dot_dimension_numbers<[1], [0], [0], [1], [0, 0, 1, 1], [], []>} : vector<32x48xbf16>, vector<48x32xbf16>, vector<32x32xf32> -> vector<32x32xf32>
    %c0_3 = arith.constant 0 : index
    %c0_4 = arith.constant 0 : index
    %4 = vector.load %arg3[%c0_3, %c0_4] : memref<1x32xf32, #tpu.memory_space<vmem>>, vector<1x32xf32>
    %5 = vector.broadcast %4 : vector<1x32xf32> to vector<32x32xf32>
    %6 = arith.addf %3, %5 : vector<32x32xf32>
    %c0_5 = arith.constant 0 : index
    %c0_6 = arith.constant 0 : index
    %7 = vector.load %arg4[%c0_5, %c0_6] : memref<1x32xf32, #tpu.memory_space<vmem>>, vector<1x32xf32>
    %c0_7 = arith.constant 0 : index
    %c0_8 = arith.constant 0 : index
    %8 = vector.load %arg5[%c0_7, %c0_8] : memref<1x32xf32, #tpu.memory_space<vmem>>, vector<1x32xf32>
    %cst_9 = arith.constant dense<0.000000e+00> : vector<32xf32>
    %9 = vector.multi_reduction <add>, %6, %cst_9 [1] : vector<32x32xf32> to vector<32xf32>
    %10 = vector.shape_cast %9 : vector<32xf32> to vector<32x1xf32>
    %cst_10 = arith.constant 3.200000e+01 : f32
    %11 = vector.broadcast %cst_10 : f32 to vector<32x1xf32>
    %12 = arith.divf %10, %11 : vector<32x1xf32>
    %13 = vector.broadcast %12 : vector<32x1xf32> to vector<32x32xf32>
    %14 = arith.subf %6, %13 : vector<32x32xf32>
    %15 = arith.mulf %14, %14 : vector<32x32xf32>
    %cst_11 = arith.constant dense<0.000000e+00> : vector<32xf32>
    %16 = vector.multi_reduction <add>, %15, %cst_11 [1] : vector<32x32xf32> to vector<32xf32>
    %17 = vector.shape_cast %16 : vector<32xf32> to vector<32x1xf32>
    %cst_12 = arith.constant 3.200000e+01 : f32
    %18 = vector.broadcast %cst_12 : f32 to vector<32x1xf32>
    %19 = arith.divf %17, %18 : vector<32x1xf32>
    %20 = vector.broadcast %12 : vector<32x1xf32> to vector<32x32xf32>
    %21 = arith.subf %6, %20 : vector<32x32xf32>
    %cst_13 = arith.constant 9.99999974E-6 : f32
    %22 = vector.broadcast %cst_13 : f32 to vector<32x1xf32>
    %23 = arith.addf %19, %22 : vector<32x1xf32>
    %24 = math.rsqrt %23 : vector<32x1xf32>
    %25 = vector.broadcast %24 : vector<32x1xf32> to vector<32x32xf32>
    %26 = arith.mulf %21, %25 : vector<32x32xf32>
    %27 = vector.broadcast %7 : vector<1x32xf32> to vector<32x32xf32>
    %28 = arith.mulf %26, %27 : vector<32x32xf32>
    %29 = vector.broadcast %8 : vector<1x32xf32> to vector<32x32xf32>
    %30 = arith.addf %28, %29 : vector<32x32xf32>
    %c0_14 = arith.constant 0 : index
    %c0_15 = arith.constant 0 : index
    %31 = vector.load %arg6[%c0_14, %c0_15] : memref<32x32xf32, #tpu.memory_space<vmem>>, vector<32x32xf32>
    tpu.vector_store %arg6[%c0_14, %c0_15], %30 {strides = array<i32>} : memref<32x32xf32, #tpu.memory_space<vmem>>, vector<32x32xf32>,
    return
  }
  func.func @transform_0(%arg0: i32) -> (i32, i32) {
    %c0_i32 = arith.constant 0 : i32
    %c0_i32_0 = arith.constant 0 : i32
    return %arg0, %c0_i32 : i32, i32
  }
  func.func @transform_1(%arg0: i32) -> (i32, i32) {
    %c0_i32 = arith.constant 0 : i32
    %c0_i32_0 = arith.constant 0 : i32
    %c0_i32_1 = arith.constant 0 : i32
    return %c0_i32, %c0_i32_0 : i32, i32
  }
  func.func @transform_2(%arg0: i32) -> (i32, i32) {
    %c0_i32 = arith.constant 0 : i32
    %c0_i32_0 = arith.constant 0 : i32
    %c0_i32_1 = arith.constant 0 : i32
    return %c0_i32, %c0_i32_0 : i32, i32
  }
  func.func @transform_3(%arg0: i32) -> (i32, i32) {
    %c0_i32 = arith.constant 0 : i32
    %c0_i32_0 = arith.constant 0 : i32
    %c0_i32_1 = arith.constant 0 : i32
    return %c0_i32, %c0_i32_0 : i32, i32
  }
  func.func @transform_4(%arg0: i32) -> (i32, i32) {
    %c0_i32 = arith.constant 0 : i32
    %c0_i32_0 = arith.constant 0 : i32
    %c0_i32_1 = arith.constant 0 : i32
    return %c0_i32, %c0_i32_0 : i32, i32
  }
  func.func @transform_5(%arg0: i32) -> (i32, i32) {
    %c0_i32 = arith.constant 0 : i32
    %c0_i32_0 = arith.constant 0 : i32
    return %arg0, %c0_i32 : i32, i32
  }
}

</mosaic_0001>

<bundles_post_ra>
// kernel: tpu_custom_call.1
= control target key start
LH: loop header
LB: loop body
LE: loop exit
PB: predicated region body
PF: predicated region fallthrough
CT: control target
= control target key end

     0   :  { %vm59_vm0 = vcmask 392192   ;;  %s348_s0 = inlined_call_operand.vmem [shape: f32[32,48], index: 0, kind: input, shape index: {}]   ;;  %s349_s1 = inlined_call_operand.vmem [shape: bf16[48,32], index: 1, kind: input, shape index: {}]   ;;  %s350_s2 = inlined_call_operand.vmem [shape: f32[1,32], index: 2, kind: input, shape index: {}]   ;;  %s351_s3 = inlined_call_operand.vmem [shape: f32[1,32], index: 3, kind: input, shape index: {}]   ;;  %s352_s4 = inlined_call_operand.vmem [shape: f32[1,32], index: 4, kind: input, shape index: {}]   ;;  %s353_s5 = inlined_call_operand.hbm [shape: f32[32,32], index: 5, kind: output, shape index: {}]  }
   0x1   :  { %v237_v0 = vld [vmem:[%s349_s1 + $0x10] sm:$0xff]   ;;  %v238_v1 = vld [vmem:[%s349_s1 + $0x8] sm:$0xff]   ;;  %v22_v2 = vld [vmem:[%s348_s0] sm:$0xff] }
   0x2   :  { %224 = vmatprep.subr.bf16.mxu0 %v237_v0  ;;  %v23_v3 = vld [vmem:[%s348_s0 + $0x8] sm:$0xff]  ;;  %v239_v4 = vld [vmem:[%s349_s1] sm:$0xff]  }
   0x3   :  { %225 = vmatpush3.bf16.msra.mxu0 %v237_v0  ;;  %v26_v5 = vpack.c.bf16 %v23_v3, %v22_v2 }
   0x4   :  { %226 = vmatprep.subr.bf16.mxu0 %v238_v1 }
   0x5   :  { %10 = vsyncpa [#allocation3], 0  ;;  %230 = vmatprep.mubr.msk.bf16.mxu0 %vm59_vm0, %v26_v5  ;;  %v24_v6 = vld [vmem:[%s348_s0 + $0x10] sm:$0xff]  ;;  %v25_v7 = vld [vmem:[%s348_s0 + $0x18] sm:$0xff]  ;;  %vm117_vm1 = vcmask 261120  }
   0x6   :  { %v27_v8 = vpack.c.bf16 %v25_v7, %v24_v6  ;;  %v211_v9 = vld [vmem:[%s350_s2] ss:$0 sm:$0xff] }
   0x7   :  { %227 = vmatpush3.bf16.msra.mxu0 %v238_v1  ;;  %v217_v55 = vld [vmem:[%s351_s3] ss:$0 sm:$0xff]  ;;  %s270_s3 = smov [#allocation2]  }
   0x8   :  { %228 = vmatprep.subr.bf16.mxu0 %v239_v4  ;;  %v218_v57 = vld [vmem:[%s352_s4] ss:$0 sm:$0xff]  ;;  %s200_s10 = sshll.u32 %s270_s3, 4  ;;  %s201_s10 = int_to_ptr.vmem [resolvable:$true] %s200_s10 }
   0x9   :  { %s248_s4 = scalar_lea.vmem %s201_s10, 512  ;;  %p253_p1 = scmp.lt.s32.totalorder %s201_s10, %s201_s10 }
   0xa   :  { %p249_p0 = scmp.ne.s32.totalorder %s201_s10, %s248_s4  ;;  %p254_p2 = scmp.lt.s32.totalorder %s248_s4, %s248_s4 }
   0xb   :  { %229 = vmatpush3.bf16.msra.mxu0 %v239_v4 }
   0xc   :  { %p255_p3 = por %p254_p2, %p253_p1 }
   0xe   :  { %231 = vmatmul.mubr.msk.bf16.vlgmr.msra.gmra.mxu0 %vm59_vm0, %v27_v8  ;;  %p256_p4 = pnand %p255_p3, %p249_p0 }
  0xce   :  { %v232_v10 = vpop.f32.mrf.mxu0 }
  0xcf   :  { %v109_v11 = vadd.f32 %v232_v10, %v211_v9 }
  0xd0   :  { %v100_v12 = vpop.f32.mrf.mxu0 }
  0xd1   :  { %v101_v13 = vadd.f32 %v211_v9, %v100_v12  ;;  %v124_v14 = vsel %vm117_vm1, %v109_v11, 0.0 }
  0xd2   :  { %125 = vadd.xlane.f32.xlu1 %v124_v14  ;;  %v233_v15 = vpop.f32.mrf.mxu0 }
  0xd3   :  { %v112_v16 = vadd.f32 %v233_v15, %v211_v9  ;;  %v118_v17 = vsel %vm117_vm1, %v101_v13, 0.0 }
  0xd4   :  { %v103_v18 = vpop.f32.mrf.mxu0  ;;  %119 = vadd.xlane.f32.xlu0 %v118_v17 }
  0xd5   :  { %v104_v19 = vadd.f32 %v211_v9, %v103_v18  ;;  %v127_v20 = vsel %vm117_vm1, %v112_v16, 0.0 }
  0xd6   :  { %128 = vadd.xlane.f32.xlu1 %v127_v20 }
  0xd7   :  { %v121_v21 = vsel %vm117_vm1, %v104_v19, 0.0 }
  0xd8   :  { %122 = vadd.xlane.f32.xlu0 %v121_v21 }
 0x15b   :  { %v126_v22 = vpop.xlane.xlu1 %125 }
 0x15c   :  { %v133_v23 = vmul.f32 0.03125, %v126_v22 }
 0x15d   :  { %v120_v24 = vpop.xlane.xlu0 %119 }
 0x15e   :  { %v131_v25 = vmul.f32 0.03125, %v120_v24  ;;  %v137_v27 = vsub.f32 %v109_v11, %v133_v23 }
 0x15f   :  { %v129_v26 = vpop.xlane.xlu1 %128 }
 0x160   :  { %v135_v28 = vsub.f32 %v101_v13, %v131_v25  ;;  %v134_v29 = vmul.f32 0.03125, %v129_v26  ;;  %v141_v36 = vmul.f32 %v137_v27, %v137_v27 }
 0x161   :  { %v123_v30 = vpop.xlane.xlu0 %122 }
 0x162   :  { %v132_v31 = vmul.f32 0.03125, %v123_v30  ;;  %v139_v32 = vmul.f32 %v135_v28, %v135_v28  ;;  %v138_v33 = vsub.f32 %v112_v16, %v134_v29  ;;  %v149_v38 = vsel %vm117_vm1, %v141_v36, 0.0 }
 0x164   :  { %v136_v34 = vsub.f32 %v104_v19, %v132_v31  ;;  %v143_v35 = vsel %vm117_vm1, %v139_v32, 0.0  ;;  %v142_v40 = vmul.f32 %v138_v33, %v138_v33 }
 0x165   :  { %144 = vadd.xlane.f32.xlu0 %v143_v35 }
 0x166   :  { %v140_v37 = vmul.f32 %v136_v34, %v136_v34  ;;  %v152_v41 = vsel %vm117_vm1, %v142_v40, 0.0 }
 0x168   :  { %v146_v39 = vsel %vm117_vm1, %v140_v37, 0.0 }
 0x169   :  { %150 = vadd.xlane.f32.xlu0 %v149_v38  ;;  %147 = vadd.xlane.f32.xlu1 %v146_v39 }
 0x16d   :  { %153 = vadd.xlane.f32.xlu1 %v152_v41 }
 0x1ee   :  { %v145_v42 = vpop.xlane.xlu0 %144 }
 0x1ef   :  { %v155_v43 = vmul.f32 0.03125, %v145_v42 }
 0x1f1   :  { %v159_v44 = vadd.f32 1e-05, %v155_v43 }
 0x1f2   :  { %v148_v45 = vpop.xlane.xlu1 %147  ;;  %v151_v46 = vpop.xlane.xlu0 %150 }
 0x1f3   :  { %240 = vrsqrt.f32 %v159_v44  ;;  %v156_v47 = vmul.f32 0.03125, %v148_v45  ;;  %v157_v48 = vmul.f32 0.03125, %v151_v46 }
 0x1f5   :  { %v160_v49 = vadd.f32 1e-05, %v156_v47  ;;  %v161_v50 = vadd.f32 1e-05, %v157_v48 }
 0x1f6   :  { %v154_v51 = vpop.xlane.xlu1 %153 }
 0x1f7   :  { %242 = vrsqrt.f32 %v160_v49  ;;  %v158_v52 = vmul.f32 0.03125, %v154_v51 }
 0x1f8   :  { %244 = vrsqrt.f32 %v161_v50 }
 0x1f9   :  { %v162_v53 = vadd.f32 1e-05, %v158_v52 }
 0x1fb   :  { %246 = vrsqrt.f32 %v162_v53 }
 0x200   :  { %v241_v54 = vpop.eup %240 }
 0x201   :  { %v167_v56 = vmul.f32 %v241_v54, %v135_v28 }
 0x203   :  { %v177_v58 = vmul.f32 %v217_v55, %v167_v56 }
 0x204   :  { %v243_v59 = vpop.eup %242 }
 0x205   :  { %v245_v60 = vpop.eup %244  ;;  %v168_v61 = vmul.f32 %v243_v59, %v136_v34  ;;  %v187_v62 = vadd.f32 %v218_v57, %v177_v58 }
 0x206   :  { %v169_v63 = vmul.f32 %v245_v60, %v137_v27 }
 0x207   :  { %v178_v0 = vmul.f32 %v217_v55, %v168_v61  ;;  %191 = vst.msk [vmem:[#allocation2] sm:$0xff] %vm117_vm1, %v187_v62 }
 0x208   :  { %v247_v1 = vpop.eup %246  ;;  %v179_v2 = vmul.f32 %v217_v55, %v169_v63 }
 0x209   :  { %v170_v3 = vmul.f32 %v247_v1, %v138_v33  ;;  %v188_v4 = vadd.f32 %v218_v57, %v178_v0 }
 0x20a   :  { %v189_v5 = vadd.f32 %v218_v57, %v179_v2 }
 0x20b   :  { %v180_v6 = vmul.f32 %v217_v55, %v170_v3  ;;  %192 = vst.msk [vmem:[#allocation2 + $0x8] sm:$0xff] %vm117_vm1, %v188_v4 }
 0x20c   :  { %193 = vst.msk [vmem:[#allocation2 + $0x10] sm:$0xff] %vm117_vm1, %v189_v5 }
 0x20d   :  { %v190_v7 = vadd.f32 %v218_v57, %v180_v6 }
 0x20f   :  { %194 = vst.msk [vmem:[#allocation2 + $0x18] sm:$0xff] %vm117_vm1, %v190_v7 }
 0x210   :  { %259 = shalt.err (!%p256_p4)
}
 0x211   :  { %s271_s11 = smov 128   ;;  %s272_s12 = smov 8  }
 0x212   :  { %206 = dma.vmem_to_hbm [thread:$0]  %s201_s10, 512, %s353_s5, [#allocation3], %s271_s11, %s271_s11, %s272_s12  }
 0x213   :  { %268 = dma.done.wait [#allocation3], 512  }
 0x214   :  { %269 = vsyncadd [#allocation3], 4294966784 }
 0x215   :  { %210 = vsyncpa [#allocation3], 1 }

</bundles_post_ra>
